<compile_context>
chip_gen: v6e
topology: v6e:2x2x1
jax: 0.10.0
libtpu: 0.0.40
codegen_flags: <defaults>
</compile_context>

<pallas_src>
import functools

import jax
import jax.numpy as jnp
from jax.experimental import pallas as pl
from jax.experimental.pallas import tpu as pltpu

_LANE = 128


def _round_up(a: int, b: int) -> int:
    return (a + b - 1) // b * b


def _sublane_multiple(dtype) -> int:
    # f32 -> 8, bf16 -> 16, int8/fp8 -> 32 (packed sublanes).
    itemsize = jnp.dtype(dtype).itemsize
    return max(8, 32 // itemsize)


def _pick_cols(total: int, max_block_cols: int) -> int:
    """Largest multiple of 128 (<= max_block_cols) that divides `total` evenly,
    falling back to a lane-dense width that requires padding."""
    best = 0
    c = _LANE
    while c <= max_block_cols:
        if total % c == 0:
            best = c
        c += _LANE
    if best:
        return best
    # No exact divisor: pick a lane-dense width, pad the tail outside the call.
    cols = min(max_block_cols, _LANE * max(1, total // _LANE))
    return max(_LANE, (cols // _LANE) * _LANE)


def _passthrough_kernel(x_ref, o_ref):
    # The base class defines no layers; concrete subclasses replace this body
    # with their fused compute.
    o_ref[...] = x_ref[...]


@functools.partial(jax.jit, static_argnames=("max_block_rows", "max_block_cols"))
def pallas_passthrough(x, *, max_block_rows: int = 512, max_block_cols: int = 1024):
    """Tiled, lane-dense, input-aliased identity pass-through."""
    orig_shape = x.shape
    dtype = x.dtype
    total = x.size
    if total == 0:
        return x

    sub = _sublane_multiple(dtype)

    # Lane-dense 2D view.
    cols = _pick_cols(total, max_block_cols)
    rows = pl.cdiv(total, cols)

    # Tile the row axis; keep blocks small enough to double-buffer comfortably
    # inside v7x's 64 MiB VMEM (a (512, 1024) f32 block is 2 MiB).
    block_rows = min(max_block_rows, _round_up(rows, sub))
    rows_padded = _round_up(rows, block_rows)

    padded_total = rows_padded * cols
    flat = x.reshape(-1)
    needs_pad = padded_total != total
    if needs_pad:
        flat = jnp.pad(flat, (0, padded_total - total))
    x2d = flat.reshape(rows_padded, cols)

    itemsize = jnp.dtype(dtype).itemsize
    block_bytes = block_rows * cols * itemsize
    # Double-buffered input + aliased output, with headroom; never assume more
    # than v7x's 64 MiB physical VMEM.
    vmem_limit = int(min(64 * 1024 * 1024, max(16 * 1024 * 1024, 6 * block_bytes)))

    y2d = pl.pallas_call(
        _passthrough_kernel,
        out_shape=jax.ShapeDtypeStruct((rows_padded, cols), dtype),
        grid=(rows_padded // block_rows,),
        in_specs=[pl.BlockSpec((block_rows, cols), lambda i: (i, 0))],
        out_specs=pl.BlockSpec((block_rows, cols), lambda i: (i, 0)),
        input_output_aliases={0: 0},
        compiler_params=pltpu.CompilerParams(
            dimension_semantics=("parallel",),
            vmem_limit_bytes=vmem_limit,
        ),
    )(x2d)

    if needs_pad:
        return y2d.reshape(-1)[:total].reshape(orig_shape)
    return y2d.reshape(orig_shape)


class BaseNetwork:
    """JAX/Pallas port of the abstract BaseNetwork."""

    def __init__(self, dropout: float, n_classes: int, use_kernel_scaffold: bool = True):
        self.dropout = dropout          # stored but unused (matches the abstract base)
        self.n_classes = n_classes      # stored but unused (matches the abstract base)
        self.use_kernel_scaffold = use_kernel_scaffold
        self.network = self.make_network()
        self.init()

    def make_network(self):
        # TODO(synk): abstract in PyTorch (`raise NotImplementedError`); the
        # base class defines no layers, so the "network" is the identity.
        return None

    def init(self):
        # Base-class init is a no-op (no parameters to initialize).
        pass

    def forward(self, x: jax.Array) -> jax.Array:
        # TODO(synk): abstract in PyTorch; the base class defines no compute,
        # so the cheapest correct implementation is simply `return x`.
        if not self.use_kernel_scaffold:
            return x
        # Kernel scaffold for concrete subclasses to fuse their layers into.
        return pallas_passthrough(x)

    def __call__(self, x: jax.Array) -> jax.Array:
        return self.forward(x)


if __name__ == "__main__":
    key = jax.random.PRNGKey(0)
    # NCHW input, small shapes: batch=2, channels=4, spatial=16x16.
    x = jax.random.normal(key, (2, 4, 16, 16), dtype=jnp.float32)

    net = BaseNetwork(dropout=0.5, n_classes=10)
    y = net(x)
    jax.block_until_ready(y)

    # The base network defines no transformation -> output must equal input.
    assert y.shape == x.shape and y.dtype == x.dtype
    assert bool(jnp.allclose(y, x))

    # Also exercise a shape whose element count is NOT a multiple of 128*8
    # (forces the padded path) to make sure both branches run clean.
    x_odd = jax.random.normal(key, (3, 5, 7, 9), dtype=jnp.float32)
    y_odd = net(x_odd)
    jax.block_until_ready(y_odd)
    assert y_odd.shape == x_odd.shape and bool(jnp.allclose(y_odd, x_odd))

    # Zero-cost path (preferred answer for the pure abstract base class).
    net_fast = BaseNetwork(dropout=0.5, n_classes=10, use_kernel_scaffold=False)
    y_fast = net_fast(x)
    jax.block_until_ready(y_fast)
    assert bool(jnp.allclose(y_fast, x))

    print("KERNEL_OK")
</pallas_src>

<mosaic_0001>
module attributes {stable_mosaic.version = 11 : i64} {
  func.func @_passthrough_kernel(%arg0: i32, %arg1: memref<8x1024xf32, #tpu.memory_space<vmem>>, %arg2: memref<8x1024xf32, #tpu.memory_space<vmem>>) attributes {dimension_semantics = [#tpu.dimension_semantics<parallel>], iteration_bounds = array<i64: 1>, scalar_prefetch = 0 : i64, scratch_operands = 0 : i64, tpu.core_type = #tpu.core_type<tc>, window_params = [{transform_indices = @transform_0, window_bounds = array<i64: 8, 1024>}, {transform_indices = @transform_1, window_bounds = array<i64: 8, 1024>}]} {
    %c0 = arith.constant 0 : index
    %c0_0 = arith.constant 0 : index
    %0 = vector.load %arg1[%c0, %c0_0] : memref<8x1024xf32, #tpu.memory_space<vmem>>, vector<8x1024xf32>
    %c0_1 = arith.constant 0 : index
    %c0_2 = arith.constant 0 : index
    %1 = vector.load %arg2[%c0_1, %c0_2] : memref<8x1024xf32, #tpu.memory_space<vmem>>, vector<8x1024xf32>
    tpu.vector_store %arg2[%c0_1, %c0_2], %0 {strides = array<i32>} : memref<8x1024xf32, #tpu.memory_space<vmem>>, vector<8x1024xf32>,
    return
  }
  func.func @transform_0(%arg0: i32) -> (i32, i32) {
    %c0_i32 = arith.constant 0 : i32
    %c0_i32_0 = arith.constant 0 : i32
    return %arg0, %c0_i32 : i32, i32
  }
  func.func @transform_1(%arg0: i32) -> (i32, i32) {
    %c0_i32 = arith.constant 0 : i32
    %c0_i32_0 = arith.constant 0 : i32
    return %arg0, %c0_i32 : i32, i32
  }
}

</mosaic_0001>

<bundles_post_ra>
// kernel: pallas_passthrough.1
= control target key start
LH: loop header
LB: loop body
LE: loop exit
PB: predicated region body
PF: predicated region fallthrough
CT: control target
= control target key end

     0   :  { %s86_s0 = inlined_call_operand.vmem [shape: f32[8,1024], index: 0, kind: input, shape index: {}, may-alias: {0,1}]   ;;  %s87_s1 = inlined_call_operand.vmem [shape: f32[8,1024], index: 1, kind: output, shape index: {}, may-alias: {0,1}]  }
   0x1   :  { %v8_v0 = vld [vmem:[%s86_s0] sm:$0xff]  ;;  %v9_v1 = vld [vmem:[%s86_s0 + $0x8] sm:$0xff]  ;;  %v10_v2 = vld [vmem:[%s86_s0 + $0x10] sm:$0xff] }
   0x2   :  { %16 = vst [vmem:[%s87_s1] sm:$0xff] %v8_v0  ;;  %17 = vst [vmem:[%s87_s1 + $0x8] sm:$0xff] %v9_v1 }
   0x3   :  { %18 = vst [vmem:[%s87_s1 + $0x10] sm:$0xff] %v10_v2 }
   0xa   :  { %v11_v3 = vld [vmem:[%s86_s0 + $0x18] sm:$0xff]  ;;  %v12_v4 = vld [vmem:[%s86_s0 + $0x20] sm:$0xff]  ;;  %v13_v5 = vld [vmem:[%s86_s0 + $0x28] sm:$0xff] }
   0xb   :  { %19 = vst [vmem:[%s87_s1 + $0x18] sm:$0xff] %v11_v3  ;;  %20 = vst [vmem:[%s87_s1 + $0x20] sm:$0xff] %v12_v4 }
   0xc   :  { %21 = vst [vmem:[%s87_s1 + $0x28] sm:$0xff] %v13_v5 }
  0x13   :  { %v14_v6 = vld [vmem:[%s86_s0 + $0x30] sm:$0xff]  ;;  %v15_v7 = vld [vmem:[%s86_s0 + $0x38] sm:$0xff] }
  0x14   :  { %22 = vst [vmem:[%s87_s1 + $0x30] sm:$0xff] %v14_v6  ;;  %23 = vst [vmem:[%s87_s1 + $0x38] sm:$0xff] %v15_v7 }

</bundles_post_ra>
